<compile_context>
chip_gen: v5e
topology: v5e:2x2
jax: 0.10.0
libtpu: 0.0.40
codegen_flags: <defaults>
</compile_context>

<pallas_src>
import functools

import jax
import jax.numpy as jnp
import numpy as np
from jax.experimental import pallas as pl
from jax.experimental.pallas import tpu as pltpu


def _round_up(x, m):
    return (x + m - 1) // m * m


def _block_kernel(x_ref, w_ref, o_ref, mu_ref, rs_ref, *,
                  TH, P, H, inv_count, need_row_mask, neg_slope, eps):
    """One (image, Cout-tile, pass, row-tile) grid step.

    x_ref : (1, 1, (TH+2)*P, C3p) bf16  kx-packed activation row slab (+2 halo rows)
    w_ref : (3, C3p, LT)          bf16  per-ky kx-packed conv weights
    o_ref : (1, TH*P, LT)         bf16  output row tile
    mu_ref, rs_ref : (1, LT)      f32   streaming sum / sum-sq, then mean / rstd
    """
    p = pl.program_id(2)      # 0: stats pass, 1: normalize pass
    r = pl.program_id(3)      # row tile
    n_r = pl.num_programs(3)
    THP = TH * P

    # 3x3 SAME conv with the kx taps packed into the contraction lanes:
    # 3 ky-shifted MXU matmuls; slice starts 0, P, 2P are multiples of 8
    # (P % 8 == 0) so every LHS load is sublane-aligned.
    acc = jnp.dot(x_ref[0, 0, 0:THP, :], w_ref[0],
                  preferred_element_type=jnp.float32)
    acc = acc + jnp.dot(x_ref[0, 0, P:P + THP, :], w_ref[1],
                        preferred_element_type=jnp.float32)
    acc = acc + jnp.dot(x_ref[0, 0, 2 * P:2 * P + THP, :], w_ref[2],
                        preferred_element_type=jnp.float32)

    # TODO(synk): Dropout2d(p=0.1) is eval-mode identity here; train mode needs a
    # per-(image, channel) pltpu.prng_* Bernoulli mask and 1/(1-p) rescale pre-norm.

    @pl.when(p == 0)
    def _stats_pass():
        @pl.when(r == 0)
        def _init():
            mu_ref[...] = jnp.zeros_like(mu_ref)
            rs_ref[...] = jnp.zeros_like(rs_ref)

        # Width-pad columns are exact conv zeros (zero LHS rows, no bias), so they
        # contribute nothing to sum / sum-sq; only padded *rows* need masking.
        if need_row_mask:
            valid = jnp.minimum(H - r * TH, TH) * P
            rows = jax.lax.broadcasted_iota(jnp.int32, (THP, 1), 0)
            am = acc * (rows < valid).astype(jnp.float32)
        else:
            am = acc
        mu_ref[...] += jnp.sum(am, axis=0, keepdims=True)
        rs_ref[...] += jnp.sum(acc * am, axis=0, keepdims=True)

        @pl.when(r == n_r - 1)
        def _finalize():
            mean = mu_ref[...] * inv_count
            var = rs_ref[...] * inv_count - mean * mean
            mu_ref[...] = mean
            rs_ref[...] = jax.lax.rsqrt(var + eps)

    @pl.when(p == 1)
    def _normalize_pass():
        y = (acc - mu_ref[...]) * rs_ref[...]
        o_ref[0] = jnp.where(y >= 0.0, y, neg_slope * y).astype(o_ref.dtype)


def conv_dropout_norm_nonlin(x_nchw, params, *, row_tile=8, eps=1e-5, neg_slope=0.01):
    """Fused Conv2d(3x3, SAME) -> Dropout2d(eval) -> InstanceNorm2d -> LeakyReLU."""
    N, Cin, H, W = x_nchw.shape
    Cout = params["w"].shape[-1]

    C3 = 3 * Cin
    C3p = _round_up(C3, 128)
    Cout_p = _round_up(Cout, 128)
    lane_tile = 256 if Cout_p % 256 == 0 else 128   # wider Cout tile for v6e/v7x MXUs
    P = _round_up(W, 8)                             # padded row stride (sublane-aligned)
    TH = max(1, min(row_tile, H))                   # output rows per grid step
    R = -(-H // TH)                                 # number of row tiles
    H_p = R * TH
    need_row_mask = (H_p != H)

    # ---- glue (plain JAX): kx-packed, channels-last, lane-dense layout ----------
    x = jnp.transpose(x_nchw, (0, 2, 3, 1)).astype(jnp.bfloat16)            # NHWC bf16
    xw = jnp.pad(x, ((0, 0), (0, 0), (1, 1), (0, 0)))                       # width halo
    xk = jnp.concatenate([xw[:, :, 0:W], xw[:, :, 1:W + 1], xw[:, :, 2:W + 2]],
                         axis=-1)                                           # (N,H,W,3Cin)
    xk = jnp.pad(xk, ((0, 0), (1, 1 + H_p - H), (0, P - W), (0, C3p - C3)))  # (N,H_p+2,P,C3p)
    # Row-tile slabs carrying their own 2 halo rows -> non-overlapping BlockSpec blocks.
    slabs = jnp.stack([xk[:, t * TH:t * TH + TH + 2] for t in range(R)], axis=1)
    xf = slabs.reshape(N, R, (TH + 2) * P, C3p)

    # Weight (3,3,Cin,Cout) HWIO -> per-ky kx-packed (3, 3*Cin, Cout), padded, bf16.
    w = params["w"].reshape(3, C3, Cout)
    w = jnp.pad(w, ((0, 0), (0, C3p - C3), (0, Cout_p - Cout))).astype(jnp.bfloat16)
    # The conv bias is intentionally not passed: InstanceNorm's mean subtraction
    # cancels it exactly, saving one DMA and one full-tile VPU add per step.

    kernel = functools.partial(
        _block_kernel, TH=TH, P=P, H=H, inv_count=1.0 / float(H * W),
        need_row_mask=need_row_mask, neg_slope=neg_slope, eps=eps)

    out_flat = pl.pallas_call(
        kernel,
        out_shape=jax.ShapeDtypeStruct((N, H_p * P, Cout_p), jnp.bfloat16),
        grid_spec=pltpu.PrefetchScalarGridSpec(
            num_scalar_prefetch=0,
            # (image, Cout tile) are embarrassingly parallel; (pass, row tile) stream
            # the InstanceNorm statistics through VMEM scratch and stay sequential.
            # Weights stay resident across both passes and all row tiles of a j;
            # the small input slabs are re-read once per pass (recompute pass 2).
            grid=(N, Cout_p // lane_tile, 2, R),
            in_specs=[
                pl.BlockSpec((1, 1, (TH + 2) * P, C3p),
                             lambda n, j, p, r: (n, r, 0, 0)),
                pl.BlockSpec((3, C3p, lane_tile),
                             lambda n, j, p, r: (0, 0, j)),
            ],
            # During the stats pass (p==0) the output block index is pinned to row
            # tile 0; that block is fully rewritten on the first normalize step
            # before it is ever flushed, so each output tile is written back to HBM
            # exactly once, with normalized data.
            out_specs=pl.BlockSpec((1, TH * P, lane_tile),
                                   lambda n, j, p, r: (n, r * p, j)),
            scratch_shapes=[pltpu.VMEM((1, lane_tile), jnp.float32),
                            pltpu.VMEM((1, lane_tile), jnp.float32)],
        ),
        compiler_params=pltpu.CompilerParams(
            dimension_semantics=("parallel", "parallel", "arbitrary", "arbitrary"),
            # Leave headroom below physical VMEM (v7x: 64 MiB/TC). Per-step blocks
            # here are small, so 48 MiB is safely sufficient on v5e/v6e/v7x alike.
            vmem_limit_bytes=48 * 1024 * 1024,
        ),
    )(xf, w)

    out = out_flat.reshape(N, H_p, P, Cout_p)[:, :H, :W, :Cout]   # drop padding
    return jnp.transpose(out, (0, 3, 1, 2))                       # NCHW, bf16


def _reference(x_nchw, params):
    """Pure-JAX f32 reference (eval mode) for a numerical sanity check."""
    x = jnp.transpose(x_nchw, (0, 2, 3, 1)).astype(jnp.float32)
    hi = jax.lax.Precision.HIGHEST
    z = jax.lax.conv_general_dilated(
        x, params["w"], window_strides=(1, 1), padding="SAME",
        dimension_numbers=("NHWC", "HWIO", "NHWC"), precision=hi) + params["b"]
    m = jnp.mean(z, axis=(1, 2), keepdims=True)
    v = jnp.mean((z - m) ** 2, axis=(1, 2), keepdims=True)
    y = (z - m) * jax.lax.rsqrt(v + 1e-5)
    y = jnp.where(y >= 0, y, 0.01 * y)
    return jnp.transpose(y, (0, 3, 1, 2))


if __name__ == "__main__":
    key = jax.random.PRNGKey(0)

    def make_case(k, N, Cin, H, W, Cout):
        kx, kw, kb = jax.random.split(k, 3)
        x = jax.random.normal(kx, (N, Cin, H, W), jnp.float32)
        params = {
            "w": jax.random.normal(kw, (3, 3, Cin, Cout), jnp.float32) / np.sqrt(9 * Cin),
            "b": jax.random.normal(kb, (Cout,), jnp.float32) * 0.1,
        }
        return x, params

    k1, k2 = jax.random.split(key)

    # Case 1: even shapes (no masking), two row tiles exercise the streaming stats.
    x, params = make_case(k1, 2, 4, 16, 16, 8)
    out = jax.block_until_ready(conv_dropout_norm_nonlin(x, params, row_tile=8))
    ref = jax.block_until_ready(_reference(x, params))
    assert out.shape == (2, 8, 16, 16)
    np.testing.assert_allclose(np.asarray(out.astype(jnp.float32)), np.asarray(ref),
                               rtol=5e-2, atol=5e-2)

    # Case 2: ragged H / W (row-mask + wrap-column paths) and 3*Cin > 128 lanes.
    x2, params2 = make_case(k2, 1, 44, 10, 12, 16)
    out2 = jax.block_until_ready(conv_dropout_norm_nonlin(x2, params2, row_tile=8))
    ref2 = jax.block_until_ready(_reference(x2, params2))
    assert out2.shape == (1, 16, 10, 12)
    np.testing.assert_allclose(np.asarray(out2.astype(jnp.float32)), np.asarray(ref2),
                               rtol=5e-2, atol=5e-2)

    print("KERNEL_OK")
</pallas_src>

<mosaic_0001>
module attributes {stable_mosaic.version = 11 : i64} {
  func.func @_block_kernel(%arg0: i32, %arg1: i32, %arg2: i32, %arg3: i32, %arg4: memref<1x1x160x128xbf16, #tpu.memory_space<vmem>>, %arg5: memref<3x128x128xbf16, #tpu.memory_space<vmem>>, %arg6: memref<1x128x128xbf16, #tpu.memory_space<vmem>>, %arg7: memref<1x128xf32, #tpu.memory_space<vmem>>, %arg8: memref<1x128xf32, #tpu.memory_space<vmem>>) attributes {dimension_semantics = [#tpu.dimension_semantics<parallel>, #tpu.dimension_semantics<parallel>, #tpu.dimension_semantics<arbitrary>, #tpu.dimension_semantics<arbitrary>], iteration_bounds = array<i64: 2, 1, 2, 2>, scalar_prefetch = 0 : i64, scratch_operands = 2 : i64, tpu.core_type = #tpu.core_type<tc>, window_params = [{transform_indices = @transform_0, window_bounds = array<i64: 1, 1, 160, 128>}, {transform_indices = @transform_1, window_bounds = array<i64: 3, 128, 128>}, {transform_indices = @transform_2, window_bounds = array<i64: 1, 128, 128>}]} {
    %c0 = arith.constant 0 : index
    %c0_0 = arith.constant 0 : index
    %c0_1 = arith.constant 0 : index
    %c0_2 = arith.constant 0 : index
    %0 = vector.load %arg4[%c0, %c0_0, %c0_1, %c0_2] : memref<1x1x160x128xbf16, #tpu.memory_space<vmem>>, vector<1x1x128x128xbf16>
    %1 = vector.shape_cast %0 : vector<1x1x128x128xbf16> to vector<128x128xbf16>
    %c0_3 = arith.constant 0 : index
    %c0_4 = arith.constant 0 : index
    %c0_5 = arith.constant 0 : index
    %2 = vector.load %arg5[%c0_3, %c0_4, %c0_5] : memref<3x128x128xbf16, #tpu.memory_space<vmem>>, vector<1x128x128xbf16>
    %3 = vector.shape_cast %2 : vector<1x128x128xbf16> to vector<128x128xbf16>
    %cst = arith.constant dense<0.000000e+00> : vector<128x128xf32>
    %4 = tpu.matmul %1, %3, %cst {dimension_numbers = #tpu.dot_dimension_numbers<[1], [0], [0], [1], [0, 0, 1, 1], [], []>} : vector<128x128xbf16>, vector<128x128xbf16>, vector<128x128xf32> -> vector<128x128xf32>
    %c0_6 = arith.constant 0 : index
    %c0_7 = arith.constant 0 : index
    %c16 = arith.constant 16 : index
    %c0_8 = arith.constant 0 : index
    %5 = vector.load %arg4[%c0_6, %c0_7, %c16, %c0_8] : memref<1x1x160x128xbf16, #tpu.memory_space<vmem>>, vector<1x1x128x128xbf16>
    %6 = vector.shape_cast %5 : vector<1x1x128x128xbf16> to vector<128x128xbf16>
    %c1 = arith.constant 1 : index
    %c0_9 = arith.constant 0 : index
    %c0_10 = arith.constant 0 : index
    %7 = vector.load %arg5[%c1, %c0_9, %c0_10] : memref<3x128x128xbf16, #tpu.memory_space<vmem>>, vector<1x128x128xbf16>
    %8 = vector.shape_cast %7 : vector<1x128x128xbf16> to vector<128x128xbf16>
    %cst_11 = arith.constant dense<0.000000e+00> : vector<128x128xf32>
    %9 = tpu.matmul %6, %8, %cst_11 {dimension_numbers = #tpu.dot_dimension_numbers<[1], [0], [0], [1], [0, 0, 1, 1], [], []>} : vector<128x128xbf16>, vector<128x128xbf16>, vector<128x128xf32> -> vector<128x128xf32>
    %10 = arith.addf %4, %9 : vector<128x128xf32>
    %c0_12 = arith.constant 0 : index
    %c0_13 = arith.constant 0 : index
    %c32 = arith.constant 32 : index
    %c0_14 = arith.constant 0 : index
    %11 = vector.load %arg4[%c0_12, %c0_13, %c32, %c0_14] : memref<1x1x160x128xbf16, #tpu.memory_space<vmem>>, vector<1x1x128x128xbf16>
    %12 = vector.shape_cast %11 : vector<1x1x128x128xbf16> to vector<128x128xbf16>
    %c2 = arith.constant 2 : index
    %c0_15 = arith.constant 0 : index
    %c0_16 = arith.constant 0 : index
    %13 = vector.load %arg5[%c2, %c0_15, %c0_16] : memref<3x128x128xbf16, #tpu.memory_space<vmem>>, vector<1x128x128xbf16>
    %14 = vector.shape_cast %13 : vector<1x128x128xbf16> to vector<128x128xbf16>
    %cst_17 = arith.constant dense<0.000000e+00> : vector<128x128xf32>
    %15 = tpu.matmul %12, %14, %cst_17 {dimension_numbers = #tpu.dot_dimension_numbers<[1], [0], [0], [1], [0, 0, 1, 1], [], []>} : vector<128x128xbf16>, vector<128x128xbf16>, vector<128x128xf32> -> vector<128x128xf32>
    %16 = arith.addf %10, %15 : vector<128x128xf32>
    %c0_i32 = arith.constant 0 : i32
    %17 = arith.cmpi eq, %arg2, %c0_i32 : i32
    %18 = arith.extui %17 : i1 to i32
    %c0_i32_18 = arith.constant 0 : i32
    %19 = arith.cmpi ne, %18, %c0_i32_18 : i32
    scf.if %19 {
      %c0_i32_20 = arith.constant 0 : i32
      %23 = arith.cmpi eq, %arg3, %c0_i32_20 : i32
      %24 = arith.extui %23 : i1 to i32
      %c0_i32_21 = arith.constant 0 : i32
      %25 = arith.cmpi ne, %24, %c0_i32_21 : i32
      scf.if %25 {
        %cst_34 = arith.constant 0.000000e+00 : f32
        %40 = vector.broadcast %cst_34 : f32 to vector<1x128xf32>
        %c0_35 = arith.constant 0 : index
        %c0_36 = arith.constant 0 : index
        %41 = vector.load %arg7[%c0_35, %c0_36] : memref<1x128xf32, #tpu.memory_space<vmem>>, vector<1x128xf32>
        tpu.vector_store %arg7[%c0_35, %c0_36], %40 {strides = array<i32>} : memref<1x128xf32, #tpu.memory_space<vmem>>, vector<1x128xf32>,
        %cst_37 = arith.constant 0.000000e+00 : f32
        %42 = vector.broadcast %cst_37 : f32 to vector<1x128xf32>
        %c0_38 = arith.constant 0 : index
        %c0_39 = arith.constant 0 : index
        %43 = vector.load %arg8[%c0_38, %c0_39] : memref<1x128xf32, #tpu.memory_space<vmem>>, vector<1x128xf32>
        tpu.vector_store %arg8[%c0_38, %c0_39], %42 {strides = array<i32>} : memref<1x128xf32, #tpu.memory_space<vmem>>, vector<1x128xf32>,
      } else {
      }
      %c0_22 = arith.constant 0 : index
      %c0_23 = arith.constant 0 : index
      %26 = vector.load %arg7[%c0_22, %c0_23] : memref<1x128xf32, #tpu.memory_space<vmem>>, vector<1x128xf32>
      %cst_24 = arith.constant dense<0.000000e+00> : vector<128xf32>
      %27 = vector.multi_reduction <add>, %16, %cst_24 [0] : vector<128x128xf32> to vector<128xf32>
      %28 = vector.shape_cast %27 : vector<128xf32> to vector<1x128xf32>
      %29 = arith.addf %26, %28 : vector<1x128xf32>
      %c0_25 = arith.constant 0 : index
      %c0_26 = arith.constant 0 : index
      %30 = vector.load %arg7[%c0_25, %c0_26] : memref<1x128xf32, #tpu.memory_space<vmem>>, vector<1x128xf32>
      tpu.vector_store %arg7[%c0_25, %c0_26], %29 {strides = array<i32>} : memref<1x128xf32, #tpu.memory_space<vmem>>, vector<1x128xf32>,
      %c0_27 = arith.constant 0 : index
      %c0_28 = arith.constant 0 : index
      %31 = vector.load %arg8[%c0_27, %c0_28] : memref<1x128xf32, #tpu.memory_space<vmem>>, vector<1x128xf32>
      %32 = arith.mulf %16, %16 : vector<128x128xf32>
      %cst_29 = arith.constant dense<0.000000e+00> : vector<128xf32>
      %33 = vector.multi_reduction <add>, %32, %cst_29 [0] : vector<128x128xf32> to vector<128xf32>
      %34 = vector.shape_cast %33 : vector<128xf32> to vector<1x128xf32>
      %35 = arith.addf %31, %34 : vector<1x128xf32>
      %c0_30 = arith.constant 0 : index
      %c0_31 = arith.constant 0 : index
      %36 = vector.load %arg8[%c0_30, %c0_31] : memref<1x128xf32, #tpu.memory_space<vmem>>, vector<1x128xf32>
      tpu.vector_store %arg8[%c0_30, %c0_31], %35 {strides = array<i32>} : memref<1x128xf32, #tpu.memory_space<vmem>>, vector<1x128xf32>,
      %c1_i32_32 = arith.constant 1 : i32
      %37 = arith.cmpi eq, %arg3, %c1_i32_32 : i32
      %38 = arith.extui %37 : i1 to i32
      %c0_i32_33 = arith.constant 0 : i32
      %39 = arith.cmpi ne, %38, %c0_i32_33 : i32
      scf.if %39 {
        %c0_34 = arith.constant 0 : index
        %c0_35 = arith.constant 0 : index
        %40 = vector.load %arg7[%c0_34, %c0_35] : memref<1x128xf32, #tpu.memory_space<vmem>>, vector<1x128xf32>
        %cst_36 = arith.constant 3.906250e-03 : f32
        %41 = vector.broadcast %cst_36 : f32 to vector<1x128xf32>
        %42 = arith.mulf %40, %41 : vector<1x128xf32>
        %c0_37 = arith.constant 0 : index
        %c0_38 = arith.constant 0 : index
        %43 = vector.load %arg8[%c0_37, %c0_38] : memref<1x128xf32, #tpu.memory_space<vmem>>, vector<1x128xf32>
        %cst_39 = arith.constant 3.906250e-03 : f32
        %44 = vector.broadcast %cst_39 : f32 to vector<1x128xf32>
        %45 = arith.mulf %43, %44 : vector<1x128xf32>
        %46 = arith.mulf %42, %42 : vector<1x128xf32>
        %47 = arith.subf %45, %46 : vector<1x128xf32>
        %c0_40 = arith.constant 0 : index
        %c0_41 = arith.constant 0 : index
        %48 = vector.load %arg7[%c0_40, %c0_41] : memref<1x128xf32, #tpu.memory_space<vmem>>, vector<1x128xf32>
        tpu.vector_store %arg7[%c0_40, %c0_41], %42 {strides = array<i32>} : memref<1x128xf32, #tpu.memory_space<vmem>>, vector<1x128xf32>,
        %cst_42 = arith.constant 9.99999974E-6 : f32
        %49 = vector.broadcast %cst_42 : f32 to vector<1x128xf32>
        %50 = arith.addf %47, %49 : vector<1x128xf32>
        %51 = math.rsqrt %50 : vector<1x128xf32>
        %c0_43 = arith.constant 0 : index
        %c0_44 = arith.constant 0 : index
        %52 = vector.load %arg8[%c0_43, %c0_44] : memref<1x128xf32, #tpu.memory_space<vmem>>, vector<1x128xf32>
        tpu.vector_store %arg8[%c0_43, %c0_44], %51 {strides = array<i32>} : memref<1x128xf32, #tpu.memory_space<vmem>>, vector<1x128xf32>,
      } else {
      }
    } else {
    }
    %c1_i32 = arith.constant 1 : i32
    %20 = arith.cmpi eq, %arg2, %c1_i32 : i32
    %21 = arith.extui %20 : i1 to i32
    %c0_i32_19 = arith.constant 0 : i32
    %22 = arith.cmpi ne, %21, %c0_i32_19 : i32
    scf.if %22 {
      %c0_20 = arith.constant 0 : index
      %c0_21 = arith.constant 0 : index
      %23 = vector.load %arg7[%c0_20, %c0_21] : memref<1x128xf32, #tpu.memory_space<vmem>>, vector<1x128xf32>
      %24 = vector.broadcast %23 : vector<1x128xf32> to vector<128x128xf32>
      %25 = arith.subf %16, %24 : vector<128x128xf32>
      %c0_22 = arith.constant 0 : index
      %c0_23 = arith.constant 0 : index
      %26 = vector.load %arg8[%c0_22, %c0_23] : memref<1x128xf32, #tpu.memory_space<vmem>>, vector<1x128xf32>
      %27 = vector.broadcast %26 : vector<1x128xf32> to vector<128x128xf32>
      %28 = arith.mulf %25, %27 : vector<128x128xf32>
      %cst_24 = arith.constant 0.000000e+00 : f32
      %29 = vector.broadcast %cst_24 : f32 to vector<128x128xf32>
      %30 = arith.cmpf oge, %28, %29 : vector<128x128xf32>
      %cst_25 = arith.constant 0.00999999977 : f32
      %31 = vector.broadcast %cst_25 : f32 to vector<128x128xf32>
      %32 = arith.mulf %31, %28 : vector<128x128xf32>
      %33 = arith.select %30, %28, %32 : vector<128x128xi1>, vector<128x128xf32>
      %34 = arith.truncf %33 : vector<128x128xf32> to vector<128x128xbf16>
      %c0_26 = arith.constant 0 : index
      %c0_27 = arith.constant 0 : index
      %c0_28 = arith.constant 0 : index
      %35 = vector.load %arg6[%c0_26, %c0_27, %c0_28] : memref<1x128x128xbf16, #tpu.memory_space<vmem>>, vector<1x128x128xbf16>
      %36 = vector.shape_cast %35 : vector<1x128x128xbf16> to vector<128x128xbf16>
      %37 = vector.shape_cast %34 : vector<128x128xbf16> to vector<1x128x128xbf16>
      tpu.vector_store %arg6[%c0_26, %c0_27, %c0_28], %37 {strides = array<i32>} : memref<1x128x128xbf16, #tpu.memory_space<vmem>>, vector<1x128x128xbf16>,
    } else {
    }
    return
  }
  func.func @transform_0(%arg0: i32, %arg1: i32, %arg2: i32, %arg3: i32) -> (i32, i32, i32, i32) {
    %c0_i32 = arith.constant 0 : i32
    %c0_i32_0 = arith.constant 0 : i32
    %c0_i32_1 = arith.constant 0 : i32
    return %arg0, %arg3, %c0_i32, %c0_i32_0 : i32, i32, i32, i32
  }
  func.func @transform_1(%arg0: i32, %arg1: i32, %arg2: i32, %arg3: i32) -> (i32, i32, i32) {
    %c0_i32 = arith.constant 0 : i32
    %c0_i32_0 = arith.constant 0 : i32
    %c0_i32_1 = arith.constant 0 : i32
    return %c0_i32, %c0_i32_0, %arg1 : i32, i32, i32
  }
  func.func @transform_2(%arg0: i32, %arg1: i32, %arg2: i32, %arg3: i32) -> (i32, i32, i32) {
    %0 = arith.muli %arg3, %arg2 : i32
    %c0_i32 = arith.constant 0 : i32
    return %arg0, %0, %arg1 : i32, i32, i32
  }
}

</mosaic_0001>

<bundles_post_ra>
// kernel: tpu_custom_call.1
= control target key start
LH: loop header
LB: loop body
LE: loop exit
PB: predicated region body
PF: predicated region fallthrough
CT: control target
= control target key end

     0   :  { %s2152_s0 = inlined_call_operand.hbm [shape: bf16[2,2,160,128], index: 0, kind: input, shape index: {}]   ;;  %s2153_s1 = inlined_call_operand.hbm [shape: bf16[3,128,128], index: 1, kind: input, shape index: {}]   ;;  %s2154_s2 = inlined_call_operand.hbm [shape: bf16[2,256,128], index: 2, kind: output, shape index: {}]  }
   0x1   :  { %2168 = sst [smem:[#allocation24_spill]] %s2153_s1 }
   0x2   :  { %2169 = sst [smem:[#allocation25_spill]] %s2154_s2 }
   0x3   :  { %7 = vsyncpa [#allocation5], 0 }
   0x4   :  { %9 = vsyncpa [#allocation5 + $0x1], 0 }
   0x5   :  { %10 = vsyncpa [#allocation8], 0 }
   0x6   :  { %11 = vsyncpa [#allocation6], 0 }
   0x7   :  { %13 = vsyncpa [#allocation6 + $0x1], 0  ;;  %s1734_s9 = smov 0   ;;  %s1736_s10 = smov 0  }
   0x8   :  { %s1738_s11 = smov 0   ;;  %s1740_s12 = smov 0  }
   0x9   :  { %s1742_s13 = smov 0   ;;  %s1744_s14 = smov 0  }
   0xa   :  { %s1746_s15 = smov 0   ;;  %s1748_s16 = smov 0  }
   0xb   :  { %s1750_s17 = smov 0   ;;  %s1752_s18 = smov 0  }
   0xc   :  { %s1754_s19 = smov 0   ;;  %s1756_s20 = smov 0  }
   0xd   :  { %s1758_s21 = smov 0  }
   0xe LB: > { %2170 = sst [smem:[#allocation13_spill]] %s1663_s9  ;;  %s1072_s22 = sadd.s32 4294967295, %s1711_s21   ;;  %s1711_s21 = sphi %s1758_s21, %s19_s21   ;;  %s1707_s20 = sphi %s1756_s20, %s2218_s20   ;;  %s1703_s19 = sphi %s1754_s19, %s2207_s19   ;;  %s1699_s18 = sphi %s1752_s18, %s2217_s18   ;;  %s1695_s17 = sphi %s1750_s17, %s2216_s17   ;;  %s1691_s16 = sphi %s1748_s16, %s2205_s16   ;;  %s1687_s15 = sphi %s1746_s15, %s2215_s15   ;;  %s1683_s14 = sphi %s1744_s14, %s2214_s14   ;;  %s1679_s13 = sphi %s1742_s13, %s2213_s13   ;;  %s1675_s12 = sphi %s1740_s12, %s2212_s12   ;;  %s1671_s11 = sphi %s1738_s11, %s2211_s11   ;;  %s1667_s10 = sphi %s1736_s10, %s2210_s10   ;;  %s1663_s9 = sphi %s1734_s9, %s2209_s9  }
   0xf   : > { %2171 = sst [smem:[#allocation14_spill]] %s1687_s15  ;;  %s1073_s23 = sadd.s32 4294967294, %s1711_s21  }
  0x10   : > { %2172 = sst [smem:[#allocation15_spill]] %s1691_s16  ;;  %p67_p0 = scmp.ne.s32.totalorder %s1679_s13, %s1675_s12 }
  0x11   : > { %2173 = sst [smem:[#allocation16_spill]] %s1695_s17  ;;  %p1800_p1 = scmp.eq.s32.totalorder %s1072_s22, 0 }
  0x12   : > { %2174 = sst [smem:[#allocation17_spill]] %s1703_s19  ;;  %p122_p2 = scmp.ne.s32.totalorder %s1671_s11, %s1667_s10 }
  0x13   : > { %2175 = sst [smem:[#allocation18_spill]] %s1711_s21  ;;  %p1809_p3 = por %p1800_p1, %p67_p0 }
  0x14   : > { %p123_p4 = scmp.eq.s32.totalorder %s1072_s22, 7  ;;  %p128_p5 = scmp.ne.s32.totalorder %s1667_s10, %s1663_s9 }
  0x15   : > { %p129_p6 = scmp.eq.s32.totalorder %s1073_s23, 7  ;;  %p1074_p8 = scmp.ge.s32.totalorder %s1711_s21, 1 }
  0x16   : > { %p1815_p7 = por %p123_p4, %p122_p2  ;;  %p136_p10 = scmp.lt.s32.totalorder %s1711_s21, 9 }
  0x17   : > { %p1820_p9 = por %p129_p6, %p128_p5  ;;  %s2182_s1 = sld [smem:[#allocation24_spill]] }
  0x18   : > { %s2178_s27 = scalar_select %p1815_p7, 1, 0 }
  0x19   : > { %s2180_s28 = scalar_select %p1820_p9, 1, 0 }
  0x1a   : > { %2179 = sst [smem:[#allocation19_spill]] %s2178_s27  ;;  %p1828_p11 = pnand %p1074_p8, %p136_p10 }
  0x1b   : > { %2181 = sst [smem:[#allocation20_spill]] %s2180_s28  ;;  %s1713_s5 = smov [#allocation7]  }
  0x1c   : > { %p1379_p12 = pneg %p1828_p11  ;;  %s151_s6 = sshll.u32 %s1713_s5, 4  ;;  %s152_s6 = int_to_ptr.vmem [resolvable:$true] %s151_s6 }
  0x1d   : > { %s149_s3 = sshll.u32 %s2182_s1, 4  ;;  %s2155_s7 = smov 64   ;;  %s150_s3 = int_to_ptr.hbm [resolvable:$true] %s149_s3 }
  0x1e   : > { %p1380_p13 = pnand %p1379_p12, %p1800_p1  ;;  %s2156_s8 = smov 4  }
  0x1f   : > { %s34_s12 = sadd.s32 1, %s1699_s18  ;;  %s37_s22 = sadd.s32 1, %s1703_s19 }
  0x20   : > { %1382 = dma.hbm_to_vmem [thread:$0]  (!%p1380_p13), %s150_s3, 3072, %s152_s6, [#allocation8], %s2155_s7, %s2155_s7, %s2156_s8  }
  0x21   : > { %p35_p0 = scmp.ge.s32.totalorder %s34_s12, 2  ;;  %s45_s23 = sadd.s32 1, %s1707_s20 }
  0x22   : > { %s54_s29 = sadd.s32 1, %s1683_s14  ;;  %p61_p2 = scmp.ne.s32.totalorder %s1683_s14, %s1679_s13 }
  0x23   : > { %s2220_s12 = smov (%p35_p0, %s34_s12), 0  ;;  %s2222_s22 = smov (!%p35_p0, %s37_s22), %s1703_s19 }
  0x24   : > { %2184 = sst [smem:[#allocation21_spill]] %s2220_s12  ;;  %s50_s30 = ssub.s32 %s1699_s18, %s2220_s12 }
  0x25   : > { %p39_p4 = scmp.ge.s32.totalorder %s2222_s22, 2  ;;  %p62_p5 = scmp.eq.s32.totalorder %s1711_s21, 0 }
  0x26   : > { %s103_s5 = smul.u32 %s1699_s18, %s1703_s19  ;;  %p1392_p6 = scmp.lt.s32.totalorder %s1711_s21, 8 }
  0x27   : > { %s2224_s22 = smov (%p39_p4, %s2222_s22), 0  ;;  %s2226_s23 = smov (!%p39_p4, %s45_s23), %s1707_s20 }
  0x28   : > { %2185 = sst [smem:[#allocation22_spill]] %s2224_s22  ;;  %p63_p8 = por %p62_p5, %p61_p2 }
  0x29   : > { %s104_s3 = smul.u32 %s2224_s22, %s2220_s12  ;;  %p47_p10 = scmp.ge.s32.totalorder %s2226_s23, 2 }
  0x2a   : > { %s165_s6 = sand.u32 1, %s1683_s14   ;;  %p1862_p12 = pnand %p1392_p6, %p63_p8 }
  0x2b   : > { %s106_s7 = ssub.s32 %s103_s5, %s104_s3  ;;  %s2228_s23 = smov (%p47_p10, %s2226_s23), 0 }
  0x2c   : > { %2186 = sst [smem:[#allocation23_spill]] %s2228_s23  ;;  %s1367_s8 = smul.u32 80, %s165_s6 }
  0x2d   : > { %s49_s1 = ssub.s32 %s1707_s20, %s2228_s23  ;;  %s1368_s19 = smul.u32 20, %s1699_s18 }
  0x2e   : > { %s51_s28 = sor.u32 %s50_s30, %s49_s1  ;;  %s107_s9 = sor.u32 %s106_s7, %s49_s1 }
  0x2f   : > { %p52_p13 = scmp.eq.s32.totalorder %s51_s28, 0  ;;  %p110_p0 = scmp.eq.s32.totalorder %s107_s9, 0 }
  0x30   : > { %s1369_s21 = smul.u32 40, %s1707_s20  ;;  %s2188_s12 = sadd.s32 1, %s1671_s11 }
  0x31   : > { %s1871_s22 = scalar_select %p52_p13, %s1683_s14, %s54_s29  }
  0x32   : > { %s1876_s5 = scalar_select %p110_p0, %s1671_s11, %s2188_s12  }
  0x33   : > { %s174_s3 = sadd.s32 %s1369_s21, %s1368_s19  ;;  %s169_s2 = scalar_lea.vmem [#allocation4], %s1367_s8 }
  0x34   : > { %s179_s27 = sshll.u32 %s169_s2, 4  ;;  %s1077_s17 = sshll.u32 %s174_s3, 2  ;;  %s180_s27 = int_to_ptr.vmem [resolvable:$true] %s179_s27 }
  0x35   : > { %s176_s23 = scalar_lea.hbm %s2152_s0, %s1077_s17  ;;  %s166_s1 = scalar_lea.sflag [#allocation5], %s165_s6 }
  0x36   : > { %s177_s30 = sshll.u32 %s176_s23, 4  ;;  %s2189_s9 = smov 4   ;;  %s178_s30 = int_to_ptr.hbm [resolvable:$true] %s177_s30 }
  0x37   : > { %s2190_s28 = smov 64   ;;  %191 = sbr.rel (%p1828_p11) target bundleno = 475 (0x1db), region = 28 }
  0x38   : > { %1386 = dma.hbm_to_vmem [thread:$0]  (!%p1862_p12), %s178_s30, 1280, %s180_s27, %s166_s1, %s2190_s28, %s2190_s28, %s2189_s9  }
  0x39   : > { %s193_s2 = sand.u32 (!%p1828_p11), 1, %s1679_s13  }
  0x3a   : > { %s1370_s19 = smul.u32 (!%p1828_p11), 80, %s193_s2  ;;  %s194_s21 = scalar_lea.sflag (!%p1828_p11), [#allocation5], %s193_s2 }
  0x3c   : > { %s1889_s7 = scalar_lea.vmem [#allocation4], %s1370_s19 }
  0x3d   : > { %1650 = dma.done.wait (%p1809_p3), %s194_s21, 1280  }
  0x3e   : > { %1652 = vsyncadd (%p1809_p3), %s194_s21, 4294966016 }
  0x3f   : > { %1654 = dma.done.wait (%p1800_p1), [#allocation8], 3072  }
  0x40   : > { %1656 = vsyncadd (%p1800_p1), [#allocation8], 4294964224  ;;  %s221_s15 = sand.u32 1, %s1667_s10   ;;  %v1279_v0 = vld [vmem:[#allocation7 + $0x78] sm:$0xff]  ;;  %v1278_v3 = vld [vmem:[#allocation7 + $0x70] sm:$0xff]  ;;  %s2191_s24 = sld [smem:[#allocation15_spill]] }
  0x41   : > { %s1902_s16 = sshll.u32 %s221_s15, 6  ;;  %v1270_v1 = vld [vmem:[#allocation7 + $0x38] sm:$0xff]  ;;  %373 = vmatpush.bf16.msra.mxu0 %v1279_v0  ;;  %1343 = vmatpush.bf16.msra.mxu3 %v1279_v0  ;;  %v1269_v4 = vld [vmem:[#allocation7 + $0x30] sm:$0xff]  ;;  %v1277_v6 = vld [vmem:[#allocation7 + $0x68] sm:$0xff] }
  0x42   : > { %v1904_v2 = vld [vmem:[#allocation7 + $0xb8] sm:$0xff]  ;;  %476 = vmatpush.bf16.msra.mxu1 %v1270_v1  ;;  %v1907_v5 = vld [vmem:[#allocation7 + $0xb0] sm:$0xff]  ;;  %v1268_v7 = vld [vmem:[#allocation7 + $0x28] sm:$0xff]  ;;  %s1970_s17 = scalar_lea.vmem [#allocation9], %s1902_s16 }
  0x43   : > { %654 = vmatpush.bf16.msra.mxu2 %v1904_v2  ;;  %v1910_v8 = vld [vmem:[#allocation7 + $0xa8] sm:$0xff]  ;;  %v1276_v9 = vld [vmem:[#allocation7 + $0x60] sm:$0xff]  ;;  %v1275_v12 = vld [vmem:[#allocation7 + $0x58] sm:$0xff] }
  0x44   : > { %v1267_v10 = vld [vmem:[#allocation7 + $0x20] sm:$0xff]  ;;  %v1266_v13 = vld [vmem:[#allocation7 + $0x18] sm:$0xff]  ;;  %v1274_v15 = vld [vmem:[#allocation7 + $0x50] sm:$0xff] }
  0x45   : > { %374 = vmatpush.bf16.msra.mxu0 %v1278_v3  ;;  %1344 = vmatpush.bf16.msra.mxu3 %v1278_v3  ;;  %v1913_v11 = vld [vmem:[#allocation7 + $0xa0] sm:$0xff]  ;;  %v1291_v14 = vld [vmem:[#allocation7 + $0x98] sm:$0xff]  ;;  %v1265_v16 = vld [vmem:[#allocation7 + $0x10] sm:$0xff] }
  0x46   : > { %477 = vmatpush.bf16.msra.mxu1 %v1269_v4  ;;  %v1290_v17 = vld [vmem:[#allocation7 + $0x90] sm:$0xff]  ;;  %v1273_v18 = vld [vmem:[#allocation7 + $0x48] sm:$0xff]  ;;  %v1272_v21 = vld [vmem:[#allocation7 + $0x40] sm:$0xff]  ;;  %p1245_p1 = scmp.ne.s32.totalorder %s2191_s24, 0 }
  0x47   : > { %655 = vmatpush.bf16.msra.mxu2 %v1907_v5  ;;  %v1264_v19 = vld [vmem:[#allocation7 + $0x8] sm:$0xff]  ;;  %v1263_v22 = vld [vmem:[#allocation7] sm:$0xff]  ;;  %s2192_s25 = sld [smem:[#allocation14_spill]] (!%p1245_p1) }
  0x48   : > { %v1289_v20 = vld [vmem:[#allocation7 + $0x88] sm:$0xff]  ;;  %v1288_v23 = vld [vmem:[#allocation7 + $0x80] sm:$0xff] }
  0x49   : > { %375 = vmatpush.bf16.msra.mxu0 %v1277_v6  ;;  %1345 = vmatpush.bf16.msra.mxu3 %v1277_v6  ;;  %v1256_v24 = vld [vmem:[%s1889_s7 + $0x8] sm:$0xff]  ;;  %v1262_v25 = vld [vmem:[%s1889_s7 + $0x38] sm:$0xff]  ;;  %v1255_v26 = vld [vmem:[%s1889_s7] sm:$0xff] }
  0x4a   : > { %478 = vmatpush.bf16.msra.mxu1 %v1268_v7  ;;  %v1280_v27 = vld [vmem:[%s1889_s7 + $0x10] sm:$0xff]  ;;  %v1271_v29 = vld [vmem:[%s1889_s7 + $0x40] sm:$0xff]  ;;  %v1281_v30 = vld [vmem:[%s1889_s7 + $0x18] sm:$0xff] }
  0x4b   : > { %656 = vmatpush.bf16.msra.mxu2 %v1910_v8  ;;  %v1257_v28 = vld [vmem:[%s1889_s7 + $0x10] sm:$0xff]  ;;  %v1258_v31 = vld [vmem:[%s1889_s7 + $0x18] sm:$0xff]  ;;  %v1282_v33 = vld [vmem:[%s1889_s7 + $0x20] sm:$0xff] }
  0x4c   : > { %v1261_v32 = vld [vmem:[%s1889_s7 + $0x30] sm:$0xff]  ;;  %v1259_v34 = vld [vmem:[%s1889_s7 + $0x20] sm:$0xff]  ;;  %v1283_v35 = vld [vmem:[%s1889_s7 + $0x28] sm:$0xff] }
  0x4d   : > { %376 = vmatpush.bf16.msra.mxu0 %v1276_v9  ;;  %1346 = vmatpush.bf16.msra.mxu3 %v1276_v9  ;;  %v1260_v36 = vld [vmem:[%s1889_s7 + $0x28] sm:$0xff]  ;;  %v1286_v37 = vld [vmem:[%s1889_s7 + $0x40] sm:$0xff]  ;;  %v1284_v38 = vld [vmem:[%s1889_s7 + $0x30] sm:$0xff]  ;;  %p1246_p3 = scmp.ne.s32.totalorder (!%p1245_p1), %s2192_s25, 0 }
  0x4e   : > { %479 = vmatpush.bf16.msra.mxu1 %v1267_v10  ;;  %v1287_v39 = vld [vmem:[%s1889_s7 + $0x48] sm:$0xff]  ;;  %v1285_v40 = vld [vmem:[%s1889_s7 + $0x38] sm:$0xff] }
  0x4f   : > { %657 = vmatpush.bf16.msra.mxu2 %v1913_v11 }
  0x51   : > { %377 = vmatpush.bf16.msra.mxu0 %v1275_v12  ;;  %1347 = vmatpush.bf16.msra.mxu3 %v1275_v12 }
  0x52   : > { %480 = vmatpush.bf16.msra.mxu1 %v1266_v13 }
  0x53   : > { %658 = vmatpush.bf16.msra.mxu2 %v1291_v14 }
  0x55   : > { %378 = vmatpush.bf16.msra.mxu0 %v1274_v15  ;;  %1348 = vmatpush.bf16.msra.mxu3 %v1274_v15 }
  0x56   : > { %481 = vmatpush.bf16.msra.mxu1 %v1265_v16 }
  0x57   : > { %659 = vmatpush.bf16.msra.mxu2 %v1290_v17 }
  0x59   : > { %379 = vmatpush.bf16.msra.mxu0 %v1273_v18  ;;  %1349 = vmatpush.bf16.msra.mxu3 %v1273_v18 }
  0x5a   : > { %482 = vmatpush.bf16.msra.mxu1 %v1264_v19 }
  0x5b   : > { %660 = vmatpush.bf16.msra.mxu2 %v1289_v20 }
  0x5d   : > { %380 = vmatpush.bf16.msra.mxu0 %v1272_v21  ;;  %1350 = vmatpush.bf16.msra.mxu3 %v1272_v21 }
  0x5e   : > { %483 = vmatpush.bf16.msra.mxu1 %v1263_v22 }
  0x5f   : > { %661 = vmatpush.bf16.msra.mxu2 %v1288_v23 }
  0x60   : > { %381 = vmatmul.bf16.vlgmr.msra.gmra.mxu0 %v1256_v24  ;;  %411 = vmatmul.bf16.vlgmr.msra.gmra.mxu3 %v1262_v25 }
  0x61   : > { %1351 = vmatpush.bf16.msrb.mxu3 %v1270_v1  ;;  %484 = vmatmul.bf16.vlgmr.msra.gmra.mxu1 %v1255_v26 }
  0x62   : > { %662 = vmatmul.bf16.vlgmr.msra.gmra.mxu2 %v1280_v27 }
  0x65   : > { %1352 = vmatpush.bf16.msrb.mxu3 %v1269_v4 }
  0x69   : > { %1353 = vmatpush.bf16.msrb.mxu3 %v1268_v7 }
  0x6d   : > { %1354 = vmatpush.bf16.msrb.mxu3 %v1267_v10 }
  0x70   : > { %386 = vmatmul.bf16.gmra.mxu0 %v1257_v28  ;;  %416 = vmatmul.bf16.gmra.mxu3 %v1271_v29 }
  0x71   : > { %1355 = vmatpush.bf16.msrb.mxu3 %v1266_v13  ;;  %489 = vmatmul.bf16.gmra.mxu1 %v1256_v24 }
  0x72   : > { %667 = vmatmul.bf16.gmra.mxu2 %v1281_v30 }
  0x75   : > { %1356 = vmatpush.bf16.msrb.mxu3 %v1265_v16 }
  0x79   : > { %1357 = vmatpush.bf16.msrb.mxu3 %v1264_v19 }
  0x7d   : > { %1358 = vmatpush.bf16.msrb.mxu3 %v1263_v22 }
  0x80   : > { %391 = vmatmul.bf16.gmra.mxu0 %v1258_v31  ;;  %514 = vmatmul.bf16.vlgmr.msrb.gmra.mxu3 %v1261_v32 }
  0x81   : > { %1359 = vmatpush.bf16.msra.mxu3 %v1904_v2  ;;  %494 = vmatmul.bf16.gmra.mxu1 %v1257_v28 }
  0x82   : > { %672 = vmatmul.bf16.gmra.mxu2 %v1282_v33 }
  0x85   : > { %1360 = vmatpush.bf16.msra.mxu3 %v1907_v5 }
  0x89   : > { %1361 = vmatpush.bf16.msra.mxu3 %v1910_v8 }
  0x8d   : > { %1362 = vmatpush.bf16.msra.mxu3 %v1913_v11 }
  0x90   : > { %396 = vmatmul.bf16.gmra.mxu0 %v1259_v34  ;;  %519 = vmatmul.bf16.gmra.mxu3 %v1262_v25 }
  0x91   : > { %1363 = vmatpush.bf16.msra.mxu3 %v1291_v14  ;;  %499 = vmatmul.bf16.gmra.mxu1 %v1258_v31 }
  0x92   : > { %677 = vmatmul.bf16.gmra.mxu2 %v1283_v35 }
  0x95   : > { %1364 = vmatpush.bf16.msra.mxu3 %v1290_v17 }
  0x99   : > { %1365 = vmatpush.bf16.msra.mxu3 %v1289_v20 }
  0x9d   : > { %1366 = vmatpush.bf16.msra.mxu3 %v1288_v23 }
  0xa0   : > { %401 = vmatmul.bf16.gmra.mxu0 %v1260_v36  ;;  %692 = vmatmul.bf16.vlgmr.msra.gmra.mxu3 %v1286_v37 }
  0xa1   : > { %504 = vmatmul.bf16.gmra.mxu1 %v1259_v34 }
  0xa2   : > { %682 = vmatmul.bf16.gmra.mxu2 %v1284_v38 }
  0xb0   : > { %406 = vmatmul.bf16.gmra.mxu0 %v1261_v32  ;;  %697 = vmatmul.bf16.gmra.mxu3 %v1287_v39 }
  0xb1   : > { %509 = vmatmul.bf16.gmra.mxu1 %v1260_v36 }
  0xb2   : > { %687 = vmatmul.bf16.gmra.mxu2 %v1285_v40 }
  0xdd   : > { %v382_v41 = vpop.f32.mrf.mxu0 }
  0xde   : > { %v485_v42 = vpop.f32.mrf.mxu1 }
  0xdf   : > { %v486_v43 = vadd.f32 %v485_v42, %v382_v41 }
  0xe3   : > { %v412_v44 = vpop.f32.mrf.mxu3 }
  0xe5   : > { %v663_v45 = vpop.f32.mrf.mxu2  ;;  %v384_v47 = vpop.f32.mrf.mxu0 }
  0xe6   : > { %v1937_v46 = vadd.f32 %v663_v45, %v486_v43  ;;  %v487_v48 = vpop.f32.mrf.mxu1 }
  0xe7   : > { %v488_v49 = vadd.f32 %v487_v48, %v384_v47 }
  0xeb   : > { %v414_v50 = vpop.f32.mrf.mxu3 }
  0xed   : > { %v665_v51 = vpop.f32.mrf.mxu2  ;;  %v387_v53 = vpop.f32.mrf.mxu0 }
  0xee   : > { %v1939_v52 = vadd.f32 %v665_v51, %v488_v49  ;;  %v490_v54 = vpop.f32.mrf.mxu1 }
  0xef   : > { %v491_v55 = vadd.f32 %v490_v54, %v387_v53 }
  0xf3   : > { %v417_v56 = vpop.f32.mrf.mxu3 }
  0xf5   : > { %v668_v57 = vpop.f32.mrf.mxu2  ;;  %v389_v59 = vpop.f32.mrf.mxu0 }
  0xf6   : > { %v1941_v58 = vadd.f32 %v668_v57, %v491_v55  ;;  %v492_v60 = vpop.f32.mrf.mxu1 }
  0xf7   : > { %v493_v61 = vadd.f32 %v492_v60, %v389_v59 }
  0xfb   : > { %v419_v62 = vpop.f32.mrf.mxu3 }
  0xfd   : > { %v670_v63 = vpop.f32.mrf.mxu2  ;;  %v392_v1 = vpop.f32.mrf.mxu0 }
  0xfe   : > { %v1943_v0 = vadd.f32 %v670_v63, %v493_v61  ;;  %v495_v2 = vpop.f32.mrf.mxu1 }
  0xff   : > { %v496_v3 = vadd.f32 %v495_v2, %v392_v1 }
 0x103   : > { %v515_v4 = vpop.f32.mrf.mxu3 }
 0x104   : > { %v516_v28 = vadd.f32 %v515_v4, %v412_v44 }
 0x105   : > { %v673_v5 = vpop.f32.mrf.mxu2  ;;  %v394_v7 = vpop.f32.mrf.mxu0 }
 0x106   : > { %v1945_v6 = vadd.f32 %v673_v5, %v496_v3  ;;  %v497_v8 = vpop.f32.mrf.mxu1 }
 0x107   : > { %v498_v9 = vadd.f32 %v497_v8, %v394_v7 }
 0x10b   : > { %v517_v10 = vpop.f32.mrf.mxu3 }
 0x10c   : > { %v518_v35 = vadd.f32 %v517_v10, %v414_v50 }
 0x10d   : > { %v675_v11 = vpop.f32.mrf.mxu2  ;;  %v397_v13 = vpop.f32.mrf.mxu0 }
 0x10e   : > { %v1947_v12 = vadd.f32 %v675_v11, %v498_v9  ;;  %v500_v14 = vpop.f32.mrf.mxu1 }
 0x10f   : > { %v501_v15 = vadd.f32 %v500_v14, %v397_v13 }
 0x113   : > { %v520_v16 = vpop.f32.mrf.mxu3 }
 0x114   : > { %v521_v44 = vadd.f32 %v520_v16, %v417_v56 }
 0x115   : > { %v678_v17 = vpop.f32.mrf.mxu2  ;;  %v399_v19 = vpop.f32.mrf.mxu0 }
 0x116   : > { %v1949_v18 = vadd.f32 %v678_v17, %v501_v15  ;;  %v502_v20 = vpop.f32.mrf.mxu1 }
 0x117   : > { %v503_v21 = vadd.f32 %v502_v20, %v399_v19 }
 0x11b   : > { %v522_v22 = vpop.f32.mrf.mxu3 }
 0x11c   : > { %v523_v53 = vadd.f32 %v522_v22, %v419_v62 }
 0x11d   : > { %v680_v23 = vpop.f32.mrf.mxu2  ;;  %v402_v25 = vpop.f32.mrf.mxu0 }
 0x11e   : > { %v1951_v24 = vadd.f32 %v680_v23, %v503_v21  ;;  %v505_v26 = vpop.f32.mrf.mxu1 }
 0x11f   : > { %v506_v27 = vadd.f32 %v505_v26, %v402_v25 }
 0x123   : > { %v693_v29 = vpop.f32.mrf.mxu3 }
 0x124   : > { %v1953_v31 = vadd.f32 %v693_v29, %v516_v28 }
 0x125   : > { %v683_v30 = vpop.f32.mrf.mxu2  ;;  %v404_v33 = vpop.f32.mrf.mxu0 }
 0x126   : > { %v1955_v32 = vadd.f32 %v683_v30, %v506_v27  ;;  %v507_v34 = vpop.f32.mrf.mxu1 }
 0x127   : > { %v508_v36 = vadd.f32 %v507_v34, %v404_v33 }
 0x12b   : > { %v695_v37 = vpop.f32.mrf.mxu3 }
 0x12c   : > { %v1957_v39 = vadd.f32 %v695_v37, %v518_v35 }
 0x12d   : > { %v685_v38 = vpop.f32.mrf.mxu2  ;;  %v407_v41 = vpop.f32.mrf.mxu0 }
 0x12e   : > { %v1959_v40 = vadd.f32 %v685_v38, %v508_v36  ;;  %v510_v42 = vpop.f32.mrf.mxu1 }
 0x12f   : > { %v511_v43 = vadd.f32 %v510_v42, %v407_v41 }
 0x133   : > { %v698_v45 = vpop.f32.mrf.mxu3 }
 0x134   : > { %v1961_v48 = vadd.f32 %v698_v45, %v521_v44 }
 0x135   : > { %v688_v47 = vpop.f32.mrf.mxu2  ;;  %v409_v51 = vpop.f32.mrf.mxu0 }
 0x136   : > { %v1963_v49 = vadd.f32 %v688_v47, %v511_v43  ;;  %v512_v50 = vpop.f32.mrf.mxu1 }
 0x137   : > { %v513_v54 = vadd.f32 %v512_v50, %v409_v51 }
 0x13a   : > { %722 = sbr.rel (%p1245_p1) target bundleno = 406 (0x196), region = 40 }
 0x13b   : > { %v700_v55 = vpop.f32.mrf.mxu3 }
 0x13c   : > { %v1965_v59 = vadd.f32 %v700_v55, %v523_v53 }
 0x13d   : > { %v690_v57 = vpop.f32.mrf.mxu2 }
 0x13e   : > { %v1967_v60 = vadd.f32 %v690_v57, %v513_v54 }
 0x13f   : > { %726 = sbr.rel (%p1246_p3) target bundleno = 327 (0x147), region = 44 }
 0x144   : > { %v1716_v56 = vmov 0.0  }
 0x145   : > { %727 = vst [vmem:[#allocation2] sm:$0x1] %v1716_v56 }
 0x146   : > { %728 = vst [vmem:[#allocation3] sm:$0x1] %v1716_v56 }
 0x147 PF: > { %v730_v61 = vadd.f32 %v1939_v52, %v1937_v46  ;;  %v754_v62 = vmul.f32 %v1937_v46, %v1937_v46  ;;  %v755_v63 = vmul.f32 %v1939_v52, %v1939_v52  ;;  %v756_v2 = vmul.f32 %v1941_v58, %v1941_v58  ;;  %s2193_s26 = sld [smem:[#allocation14_spill]] }
 0x148   : > { %v757_v4 = vmul.f32 %v1943_v0, %v1943_v0  ;;  %v758_v8 = vmul.f32 %v1945_v6, %v1945_v6  ;;  %v759_v11 = vmul.f32 %v1947_v12, %v1947_v12  ;;  %v760_v15 = vmul.f32 %v1949_v18, %v1949_v18 }
 0x149   : > { %v731_v1 = vadd.f32 %v730_v61, %v1941_v58  ;;  %v770_v5 = vadd.f32 %v755_v63, %v754_v62  ;;  %v761_v19 = vmul.f32 %v1951_v24, %v1951_v24  ;;  %v762_v22 = vmul.f32 %v1955_v32, %v1955_v32 }
 0x14a   : > { %v763_v26 = vmul.f32 %v1959_v40, %v1959_v40  ;;  %v764_v29 = vmul.f32 %v1963_v49, %v1963_v49  ;;  %v765_v34 = vmul.f32 %v1967_v60, %v1967_v60  ;;  %v766_v37 = vmul.f32 %v1953_v31, %v1953_v31 }
 0x14b   : > { %v732_v3 = vadd.f32 %v731_v1, %v1943_v0  ;;  %v771_v9 = vadd.f32 %v770_v5, %v756_v2  ;;  %v767_v42 = vmul.f32 %v1957_v39, %v1957_v39  ;;  %v768_v45 = vmul.f32 %v1961_v48, %v1961_v48 }
 0x14c   : > { %v769_v50 = vmul.f32 %v1965_v59, %v1965_v59 }
 0x14d   : > { %v733_v7 = vadd.f32 %v732_v3, %v1945_v6  ;;  %v772_v13 = vadd.f32 %v771_v9, %v757_v4  ;;  %v729_v4 = vld [vmem:[#allocation2] sm:$0x1]  ;;  %p1247_p11 = scmp.ne.s32.totalorder %s2193_s26, 1 }
 0x14f   : > { %v734_v10 = vadd.f32 %v733_v7, %v1947_v12  ;;  %v773_v16 = vadd.f32 %v772_v13, %v758_v8 }
 0x151   : > { %v735_v14 = vadd.f32 %v734_v10, %v1949_v18  ;;  %v774_v20 = vadd.f32 %v773_v16, %v759_v11  ;;  %v753_v10 = vld [vmem:[#allocation3] sm:$0x1] }
 0x153   : > { %v736_v17 = vadd.f32 %v735_v14, %v1951_v24  ;;  %v775_v23 = vadd.f32 %v774_v20, %v760_v15 }
 0x155   : > { %v737_v21 = vadd.f32 %v736_v17, %v1955_v32  ;;  %v776_v27 = vadd.f32 %v775_v23, %v761_v19 }
 0x157   : > { %v738_v25 = vadd.f32 %v737_v21, %v1959_v40  ;;  %v777_v30 = vadd.f32 %v776_v27, %v762_v22 }
 0x159   : > { %v739_v28 = vadd.f32 %v738_v25, %v1963_v49  ;;  %v778_v35 = vadd.f32 %v777_v30, %v763_v26 }
 0x15b   : > { %v740_v33 = vadd.f32 %v739_v28, %v1967_v60  ;;  %v779_v38 = vadd.f32 %v778_v35, %v764_v29 }
 0x15d   : > { %v741_v36 = vadd.f32 %v740_v33, %v1953_v31  ;;  %v780_v43 = vadd.f32 %v779_v38, %v765_v34 }
 0x15f   : > { %v742_v41 = vadd.f32 %v741_v36, %v1957_v39  ;;  %v781_v47 = vadd.f32 %v780_v43, %v766_v37 }
 0x161   : > { %v743_v44 = vadd.f32 %v742_v41, %v1961_v48  ;;  %v782_v53 = vadd.f32 %v781_v47, %v767_v42 }
 0x163   : > { %v744_v51 = vadd.f32 %v743_v44, %v1965_v59  ;;  %v783_v55 = vadd.f32 %v782_v53, %v768_v45 }
 0x165   : > { %v745_v54 = vrot.slane %v744_v51, 4  ;;  %v784_v56 = vadd.f32 %v783_v55, %v769_v50 }
 0x167   : > { %v746_v57 = vadd.f32 %v745_v54, %v744_v51  ;;  %v785_v62 = vrot.slane %v784_v56, 4 }
 0x169   : > { %v747_v61 = vrot.slane %v746_v57, 2  ;;  %v786_v1 = vadd.f32 %v785_v62, %v784_v56 }
 0x16b   : > { %v748_v63 = vadd.f32 %v747_v61, %v746_v57  ;;  %v787_v3 = vrot.slane %v786_v1, 2 }
 0x16d   : > { %v749_v2 = vrot.slane %v748_v63, 1  ;;  %v788_v7 = vadd.f32 %v787_v3, %v786_v1 }
 0x16f   : > { %v750_v5 = vadd.f32 %v749_v2, %v748_v63  ;;  %v789_v9 = vrot.slane %v788_v7, 1 }
 0x171   : > { %v751_v8 = vadd.f32 %v750_v5, %v729_v4  ;;  %v790_v11 = vadd.f32 %v789_v9, %v788_v7  ;;  %796 = sbr.rel (%p1247_p11) target bundleno = 406 (0x196), region = 48 }
 0x173   : > { %752 = vst [vmem:[#allocation2] sm:$0x1] %v751_v8  ;;  %v791_v13 = vadd.f32 %v790_v11, %v753_v10 }
 0x175   : > { %792 = vst [vmem:[#allocation3] sm:$0x1] %v791_v13 }
 0x17a   : > { %v797_v14 = vld [vmem:[#allocation2] sm:$0x1] }
 0x17b   : > { %v798_v16 = vmul.f32 0.00390625, %v797_v14 }
 0x17c   : > { %v799_v15 = vld [vmem:[#allocation3] sm:$0x1] }
 0x17d   : > { %v800_v17 = vmul.f32 0.00390625, %v799_v15  ;;  %v801_v19 = vmul.f32 %v798_v16, %v798_v16  ;;  %803 = vst [vmem:[#allocation2] sm:$0x1] %v798_v16 }
 0x17f   : > { %v802_v20 = vsub.f32 %v800_v17, %v801_v19 }
 0x181   : > { %v804_v21 = vadd.f32 1e-05, %v802_v20 }
 0x183   : > { %1505 = vrsqrt.f32 %v804_v21  ;;  %vm811_vm0 = vweird.f32 %v804_v21 }
 0x189   : > { %v1506_v22 = vpop.eup %1505 }
 0x18a   : > { %v806_v23 = vmul.f32 %v1506_v22, %v804_v21  ;;  %vm812_vm1 = vweird.f32 %v1506_v22 }
 0x18b   : > { %vm813_vm2 = vmor %vm811_vm0, %vm812_vm1 }
 0x18c   : > { %v807_v25 = vmul.f32 %v1506_v22, %v806_v23 }
 0x18e   : > { %v808_v26 = vmul.f32 0.5, %v807_v25 }
 0x190   : > { %v809_v27 = vsub.f32 1.5, %v808_v26 }
 0x192   : > { %v810_v28 = vmul.f32 %v1506_v22, %v809_v27 }
 0x194   : > { %v814_v29 = vsel %vm813_vm2, %v1506_v22, %v810_v28 }
 0x195   : > { %815 = vst [vmem:[#allocation3] sm:$0x1] %v814_v29 }
 0x196 PF: > { %s2194_s27 = sld [smem:[#allocation15_spill]] }
 0x19c   : > { %p1248_p2 = scmp.ne.s32.totalorder %s2194_s27, 1 }
 0x19e   : > { %819 = sbr.rel (%p1248_p2) target bundleno = 448 (0x1c0), region = 52 }
 0x1a3   : > { %v2024_v30 = vld [vmem:[#allocation2] ss:$0 sm:$0xff]  ;;  %v2026_v33 = vld [vmem:[#allocation3] ss:$0 sm:$0xff] }
 0x1a4   : > { %v824_v34 = vsub.f32 %v1937_v46, %v2024_v30  ;;  %v825_v35 = vsub.f32 %v1939_v52, %v2024_v30  ;;  %v826_v36 = vsub.f32 %v1941_v58, %v2024_v30  ;;  %v827_v37 = vsub.f32 %v1943_v0, %v2024_v30 }
 0x1a5   : > { %v828_v38 = vsub.f32 %v1945_v6, %v2024_v30  ;;  %v829_v41 = vsub.f32 %v1947_v12, %v2024_v30  ;;  %v830_v42 = vsub.f32 %v1949_v18, %v2024_v30  ;;  %v831_v46 = vsub.f32 %v1951_v24, %v2024_v30 }
 0x1a6   : > { %v844_v52 = vmul.f32 %v2026_v33, %v824_v34  ;;  %v845_v43 = vmul.f32 %v2026_v33, %v825_v35  ;;  %v846_v58 = vmul.f32 %v2026_v33, %v826_v36  ;;  %v847_v0 = vmul.f32 %v2026_v33, %v827_v37 }
 0x1a7   : > { %v848_v44 = vmul.f32 %v2026_v33, %v828_v38  ;;  %v849_v6 = vmul.f32 %v2026_v33, %v829_v41  ;;  %v850_v12 = vmul.f32 %v2026_v33, %v830_v42  ;;  %v851_v45 = vmul.f32 %v2026_v33, %v831_v46 }
 0x1a8   : > { %vm860_vm3 = vcmp.ge.f32.partialorder %v844_v52, 0.0  ;;  %vm861_vm4 = vcmp.ge.f32.partialorder %v845_v43, 0.0  ;;  %v876_v18 = vmul.f32 0.01, %v844_v52  ;;  %v877_v24 = vmul.f32 0.01, %v845_v43 }
 0x1a9   : > { %vm862_vm5 = vcmp.ge.f32.partialorder %v846_v58, 0.0  ;;  %vm863_vm6 = vcmp.ge.f32.partialorder %v847_v0, 0.0  ;;  %v878_v47 = vmul.f32 0.01, %v846_v58  ;;  %v879_v51 = vmul.f32 0.01, %v847_v0 }
 0x1aa   : > { %v892_v50 = vsel %vm860_vm3, %v844_v52, %v876_v18  ;;  %v893_v53 = vsel %vm861_vm4, %v845_v43, %v877_v24  ;;  %vm864_vm7 = vcmp.ge.f32.partialorder %v848_v44, 0.0  ;;  %vm865_vm8 = vcmp.ge.f32.partialorder %v849_v6, 0.0 }
 0x1ab   : > { %v1299_v54 = vpack.c.bf16 %v893_v53, %v892_v50  ;;  %v894_v55 = vsel %vm862_vm5, %v846_v58, %v878_v47  ;;  %v895_v57 = vsel %vm863_vm6, %v847_v0, %v879_v51  ;;  %v880_v56 = vmul.f32 0.01, %v848_v44 }
 0x1ac   : > { %v1304_v61 = vpack.c.bf16 %v895_v57, %v894_v55  ;;  %v881_v62 = vmul.f32 0.01, %v849_v6  ;;  %vm866_vm9 = vcmp.ge.f32.partialorder %v850_v12, 0.0  ;;  %vm867_vm10 = vcmp.ge.f32.partialorder %v851_v45, 0.0 }
 0x1ad   : > { %1300 = vst [vmem:[%s1970_s17] sm:$0xff] %v1299_v54   ;;  %v896_v63 = vsel %vm864_vm7, %v848_v44, %v880_v56  ;;  %v882_v1 = vmul.f32 0.01, %v850_v12  ;;  %v883_v2 = vmul.f32 0.01, %v851_v45  ;;  %v832_v3 = vsub.f32 %v1955_v32, %v2024_v30 }
 0x1ae   : > { %1336 = vst [vmem:[%s1970_s17 + $0x8] sm:$0xff] %v1304_v61   ;;  %v897_v4 = vsel %vm865_vm8, %v849_v6, %v881_v62  ;;  %v833_v5 = vsub.f32 %v1959_v40, %v2024_v30  ;;  %v834_v7 = vsub.f32 %v1963_v49, %v2024_v30  ;;  %v835_v8 = vsub.f32 %v1967_v60, %v2024_v30 }
 0x1af   : > { %v1309_v9 = vpack.c.bf16 %v897_v4, %v896_v63  ;;  %v898_v10 = vsel %vm866_vm9, %v850_v12, %v882_v1  ;;  %v899_v11 = vsel %vm867_vm10, %v851_v45, %v883_v2  ;;  %v852_v13 = vmul.f32 %v2026_v33, %v832_v3 }
 0x1b0   : > { %v1314_v14 = vpack.c.bf16 %v899_v11, %v898_v10  ;;  %v853_v32 = vmul.f32 %v2026_v33, %v833_v5  ;;  %v854_v15 = vmul.f32 %v2026_v33, %v834_v7  ;;  %v855_v16 = vmul.f32 %v2026_v33, %v835_v8 }
 0x1b1   : > { %1337 = vst [vmem:[%s1970_s17 + $0x10] sm:$0xff] %v1309_v9   ;;  %vm868_vm11 = vcmp.ge.f32.partialorder %v852_v13, 0.0  ;;  %v884_v40 = vmul.f32 0.01, %v852_v13  ;;  %v836_v49 = vsub.f32 %v1953_v31, %v2024_v30  ;;  %v837_v60 = vsub.f32 %v1957_v39, %v2024_v30 }
 0x1b2   : > { %1338 = vst [vmem:[%s1970_s17 + $0x18] sm:$0xff] %v1314_v14   ;;  %vm869_vm12 = vcmp.ge.f32.partialorder %v853_v32, 0.0  ;;  %v885_v17 = vmul.f32 0.01, %v853_v32  ;;  %vm870_vm13 = vcmp.ge.f32.partialorder %v854_v15, 0.0  ;;  %vm871_vm14 = vcmp.ge.f32.partialorder %v855_v16, 0.0 }
 0x1b3   : > { %v900_v19 = vsel %vm868_vm11, %v852_v13, %v884_v40  ;;  %v886_v20 = vmul.f32 0.01, %v854_v15  ;;  %v887_v21 = vmul.f32 0.01, %v855_v16  ;;  %v856_v22 = vmul.f32 %v2026_v33, %v836_v49 }
 0x1b4   : > { %v901_v23 = vsel %vm869_vm12, %v853_v32, %v885_v17  ;;  %v857_v25 = vmul.f32 %v2026_v33, %v837_v60  ;;  %v838_v31 = vsub.f32 %v1961_v48, %v2024_v30  ;;  %v839_v39 = vsub.f32 %v1965_v59, %v2024_v30 }
 0x1b5   : > { %v1319_v26 = vpack.c.bf16 %v901_v23, %v900_v19  ;;  %v902_v27 = vsel %vm870_vm13, %v854_v15, %v886_v20  ;;  %v903_v28 = vsel %vm871_vm14, %v855_v16, %v887_v21  ;;  %vm872_vm15 = vcmp.ge.f32.partialorder %v856_v22, 0.0 }
 0x1b6   : > { %v1324_v29 = vpack.c.bf16 %v903_v28, %v902_v27  ;;  %vm873_vm0 = vcmp.ge.f32.partialorder %v857_v25, 0.0  ;;  %v888_v34 = vmul.f32 0.01, %v856_v22  ;;  %v889_v35 = vmul.f32 0.01, %v857_v25 }
 0x1b7   : > { %1339 = vst [vmem:[%s1970_s17 + $0x20] sm:$0xff] %v1319_v26   ;;  %v858_v36 = vmul.f32 %v2026_v33, %v838_v31  ;;  %v859_v37 = vmul.f32 %v2026_v33, %v839_v39 }
 0x1b8   : > { %1340 = vst [vmem:[%s1970_s17 + $0x28] sm:$0xff] %v1324_v29   ;;  %v904_v48 = vsel %vm872_vm15, %v856_v22, %v888_v34  ;;  %v905_v38 = vsel %vm873_vm0, %v857_v25, %v889_v35 }
 0x1b9   : > { %v1329_v41 = vpack.c.bf16 %v905_v38, %v904_v48  ;;  %vm874_vm1 = vcmp.ge.f32.partialorder %v858_v36, 0.0  ;;  %vm875_vm2 = vcmp.ge.f32.partialorder %v859_v37, 0.0  ;;  %v890_v59 = vmul.f32 0.01, %v858_v36 }
 0x1ba   : > { %v891_v30 = vmul.f32 0.01, %v859_v37 }
 0x1bb   : > { %1341 = vst [vmem:[%s1970_s17 + $0x30] sm:$0xff] %v1329_v41   ;;  %v906_v42 = vsel %vm874_vm1, %v858_v36, %v890_v59 }
 0x1bc   : > { %v907_v46 = vsel %vm875_vm2, %v859_v37, %v891_v30 }
 0x1bd   : > { %v1334_v52 = vpack.c.bf16 %v907_v46, %v906_v42 }
 0x1bf   : > { %1342 = vst [vmem:[%s1970_s17 + $0x38] sm:$0xff] %v1334_v52  }
 0x1c0 PF: > { %s2195_s4 = sld [smem:[#allocation15_spill]]  ;;  %s957_s3 = sshll.u32 %s1970_s17, 4  ;;  %s958_s3 = int_to_ptr.vmem [resolvable:$true] %s957_s3 }
 0x1c1   : > { %s2196_s8 = sld [smem:[#allocation14_spill]]  ;;  %s941_s24 = scalar_lea.sflag [#allocation6], %s221_s15 }
 0x1c2   : > { %s2197_s12 = sld [smem:[#allocation16_spill]] }
 0x1c3   : > { %s2199_s19 = sld [smem:[#allocation25_spill]] }
 0x1c7   : > { %s948_s29 = smul.u32 %s2196_s8, %s2195_s4 }
 0x1c8   : > { %s1251_s6 = sshll.u32 %s2197_s12, 5 }
 0x1c9   : > { %s1250_s30 = sshll.u32 %s948_s29, 4  ;;  %s2200_s7 = smov %s2199_s19 }
 0x1ca   : > { %s954_s1 = sadd.s32 %s1251_s6, %s1250_s30  ;;  %s1589_s4 = scalar_lea.hbm %s2200_s7, 256 }
 0x1cb   : > { %s1252_s9 = sshll.u32 %s954_s1, 2 }
 0x1cc   : > { %s956_s21 = scalar_lea.hbm %s2199_s19, %s1252_s9 }
 0x1cd   : > { %s959_s16 = sshll.u32 %s956_s21, 4  ;;  %s960_s16 = int_to_ptr.hbm [resolvable:$true] %s959_s16 }
 0x1ce   : > { %s1583_s25 = sshra.s32 %s960_s16, 4  ;;  %s1584_s25 = int_to_ptr.hbm [resolvable:$true] %s1583_s25 }
 0x1cf   : > { %s1585_s26 = scalar_lea.hbm %s1584_s25, 64  ;;  %p1590_p8 = scmp.lt.s32.totalorder %s1584_s25, %s2200_s7 }
 0x1d0   : > { %p1586_p4 = scmp.ne.s32.totalorder %s1584_s25, %s1585_s26  ;;  %p1591_p10 = scmp.lt.s32.totalorder %s1589_s4, %s1585_s26 }
 0x1d2   : > { %p1587_p5 = pnand %p1586_p4, %p1815_p7  ;;  %p1592_p12 = por %p1591_p10, %p1590_p8 }
 0x1d4   : > { %p1588_p6 = pneg %p1587_p5 }
 0x1d6   : > { %p1593_p13 = pnand %p1592_p12, %p1588_p6 }
 0x1d8   : > { %1596 = shalt.err (!%p1593_p13)
}
 0x1d9   : > { %s1717_s15 = smov 64   ;;  %s1718_s29 = smov 4  }
 0x1da   : > { %1377 = dma.vmem_to_hbm [thread:$0]  (%p1815_p7), %s958_s3, 1024, %s960_s16, %s941_s24, %s1717_s15, %s1717_s15, %s1718_s29  }
 0x1db PF: > { %s2201_s6 = sld [smem:[#allocation18_spill]] }
 0x1dc   : > { %s2202_s30 = sld [smem:[#allocation13_spill]] }
 0x1e1   : > { %p1394_p0 = scmp.ge.s32.totalorder %s2201_s6, 2 }
 0x1e2   : > { %s974_s9 = sand.u32 1, %s2202_s30  }
 0x1e3   : > { %p1388_p1 = pnand %p1394_p0, %p1820_p9  ;;  %s975_s28 = scalar_lea.sflag [#allocation6], %s974_s9 }
 0x1e5   : > { %p1389_p3 = pneg %p1388_p1 }
 0x1e7   : > { %1658 = dma.done.wait (%p1389_p3), %s975_s28, 1024  }
 0x1e8   : > { %1660 = vsyncadd (%p1389_p3), %s975_s28, 4294966272  ;;  %s19_s21 = sadd.s32 1, %s2201_s6   ;;  %s2205_s16 = sld [smem:[#allocation17_spill]] }
 0x1e9   : > { %p2108_p11 = scmp.ge.s32.totalorder %s19_s21, 10   ;;  %s2206_s23 = sld [smem:[#allocation21_spill]] }
 0x1ea   : > { %s2207_s19 = sld [smem:[#allocation22_spill]]  ;;  %s2209_s9 = smov %s1667_s10 }
 0x1eb   : > { %s2208_s3 = sld [smem:[#allocation23_spill]]  ;;  %s2210_s10 = smov %s1671_s11 }
 0x1ec   : > { %s2211_s11 = smov %s1876_s5  ;;  %s2212_s12 = smov %s1679_s13 }
 0x1ed   : > { %s2213_s13 = smov %s1683_s14  ;;  %s2214_s14 = smov %s1871_s22 }
 0x1ee   : > { %s2215_s15 = smov %s1699_s18  ;;  %s2216_s17 = smov %s1707_s20 }
 0x1ef   : > { %s2217_s18 = smov %s2206_s23  ;;  %18 = sbr.rel (!%p2108_p11) target bundleno = 14 (0xe), region = 96 }
 0x1f1   : > { %s2218_s20 = smov %s2208_s3 }
 0x1f4   :  { %981 = vsyncpa [#allocation5], 1 }
 0x1f5   :  { %983 = vsyncpa [#allocation5 + $0x1], 1 }
 0x1f6   :  { %984 = vsyncpa [#allocation8], 1 }
 0x1f7   :  { %985 = vsyncpa [#allocation6], 1 }
 0x1f8   :  { %987 = vsyncpa [#allocation6 + $0x1], 1 }

</bundles_post_ra>
